<compile_context>
chip_gen: v7x
topology: tpu7x:2x2x1
jax: 0.10.0
libtpu: 0.0.40
codegen_flags: <defaults>
</compile_context>

<pallas_src>
import functools

import jax
import jax.numpy as jnp
from jax.experimental import pallas as pl
from jax.experimental.pallas import tpu as pltpu

_LANES = 128


def _bpr_kernel(n_valid, reg_lambda, chunk_rows,
                pid0_ref, split_ref, pid1_ref,     # scalar-prefetch tables (SMEM)
                pos_ref, neg_ref, slab_ref,        # inputs
                out_ref,                           # output: (1,) f32 in SMEM
                acc_ref):                          # scratch: (n_params, 8, 128) f32
    i = pl.program_id(0)
    tile_rows = slab_ref.shape[0]
    n_chunks = tile_rows // chunk_rows

    @pl.when(i == 0)
    def _init():
        acc_ref[...] = jnp.zeros_like(acc_ref)

    pid0 = pid0_ref[i]
    pid1 = pid1_ref[i]
    split = split_ref[i]          # rows [0, split) -> pid0, rows [split, T) -> pid1
    zeros8 = jnp.zeros((8, _LANES), jnp.float32)

    # ---- fast path: entire tile belongs to one parameter (common case) ------
    @pl.when(split >= tile_rows)
    def _single_segment():
        def body(c, part):
            x = slab_ref[pl.ds(c * chunk_rows, chunk_rows), :].astype(jnp.float32)
            x2 = x * x
            return part + jnp.sum(x2.reshape(chunk_rows // 8, 8, _LANES), axis=0)
        part = jax.lax.fori_loop(0, n_chunks, body, zeros8)
        acc_ref[pid0] = acc_ref[pid0] + part

    # ---- slow path: tile spans the boundary between pid0 and pid1 (rare) ----
    @pl.when(split < tile_rows)
    def _two_segments():
        def body(c, carry):
            p0, pt = carry
            r0 = c * chunk_rows
            x = slab_ref[pl.ds(r0, chunk_rows), :].astype(jnp.float32)
            x2 = x * x
            row = jax.lax.broadcasted_iota(jnp.int32, x2.shape, 0) + r0
            x2m = jnp.where(row < split, x2, 0.0)
            p0 = p0 + jnp.sum(x2m.reshape(chunk_rows // 8, 8, _LANES), axis=0)
            pt = pt + jnp.sum(x2.reshape(chunk_rows // 8, 8, _LANES), axis=0)
            return p0, pt
        p0, pt = jax.lax.fori_loop(0, n_chunks, body, (zeros8, zeros8))
        acc_ref[pid0] = acc_ref[pid0] + p0
        acc_ref[pid1] = acc_ref[pid1] + (pt - p0)   # second segment = total - first

    # ---- finalize: BPR term + per-parameter sqrt + scalar store --------------
    @pl.when(i == pl.num_programs(0) - 1)
    def _finalize():
        diff = pos_ref[...] - neg_ref[...]          # (s_rows, 128) f32
        # Numerically stable log(sigmoid(x)) = min(x, 0) - log1p(exp(-|x|)).
        log_sig = jnp.minimum(diff, 0.0) - jnp.log1p(jnp.exp(-jnp.abs(diff)))
        sr, sc = diff.shape
        flat_idx = (jax.lax.broadcasted_iota(jnp.int32, (sr, sc), 0) * sc
                    + jax.lax.broadcasted_iota(jnp.int32, (sr, sc), 1))
        valid = flat_idx < n_valid
        denom = jnp.float32(max(n_valid, 1))        # guard against empty batch
        loss = -jnp.sum(jnp.where(valid, log_sig, 0.0)) / denom

        per_lane = jnp.sum(acc_ref[...], axis=1)                # (n_params, 128)
        per_param = jnp.sum(per_lane, axis=-1, keepdims=True)    # (n_params, 1)
        reg = jnp.sum(jnp.sqrt(per_param))

        out_ref[0] = loss + jnp.float32(reg_lambda) * reg


def _build_param_stream(kernel_params, tile_rows, slab_dtype):
    """Pack large params into a lane-dense slab with <=1 row padding each and
    build per-tile (pid0, split_row, pid1) tables for segment accumulation."""
    chunks, rows_per = [], []
    for p in kernel_params:
        flat = jnp.ravel(p).astype(slab_dtype)
        n = int(flat.shape[0])
        r = -(-n // _LANES)                      # ceil(n / 128)
        pad = r * _LANES - n
        if pad:
            flat = jnp.pad(flat, (0, pad))       # <=127 zero elements per param
        chunks.append(flat.reshape(r, _LANES))
        rows_per.append(r)

    starts, row = [], 0
    for r in rows_per:
        starts.append(row)
        row += r
    used_rows = row
    total_rows = max(-(-used_rows // tile_rows), 1) * tile_rows
    if total_rows > used_rows:
        chunks.append(jnp.zeros((total_rows - used_rows, _LANES), slab_dtype))
    slab = jnp.concatenate(chunks, axis=0)       # (total_rows, 128)

    ends = [starts[k] + rows_per[k] for k in range(len(rows_per))]
    ends[-1] = total_rows                        # trailing zero pad -> last param
    num_tiles = total_rows // tile_rows

    pid0, split, pid1 = [], [], []
    k = 0
    for t in range(num_tiles):
        r0 = t * tile_rows
        while ends[k] <= r0:
            k += 1
        s = min(ends[k] - r0, tile_rows)
        pid0.append(k)
        split.append(s)
        # Every kernel param spans >= tile_rows rows, so a tile holds at most
        # two params; when it does, the second one is simply k + 1.
        pid1.append(k if s == tile_rows else k + 1)

    return (slab,
            jnp.asarray(pid0, jnp.int32),
            jnp.asarray(split, jnp.int32),
            jnp.asarray(pid1, jnp.int32))


def bpr_loss(pos_scores, neg_scores, model_params, reg_lambda=0.01,
             tile_rows=2048):
    """Pallas implementation of BPRLoss.forward.

    pos_scores, neg_scores: (B,) float arrays
    model_params: list of float arrays (any rank)
    tile_rows: streamed slab block is (tile_rows, 128).  Guidance:
        v5e/v6e: 2048 (1 MiB f32 blocks), v7x: 4096-8192.
    returns: scalar float32
    """
    assert tile_rows >= 8 and tile_rows % 8 == 0
    if tile_rows > 256:
        assert tile_rows % 256 == 0

    B = int(pos_scores.shape[0])

    # ---- scores: lane-dense (s_rows, 128), zero-padded, masked in-kernel ----
    s_rows = max(-(-B // _LANES), 1)
    pad_s = s_rows * _LANES - B

    def _scores2d(x):
        x = jnp.ravel(x).astype(jnp.float32)
        if pad_s:
            x = jnp.pad(x, (0, pad_s))
        return x.reshape(s_rows, _LANES)

    pos2d = _scores2d(pos_scores)
    neg2d = _scores2d(neg_scores)

    # ---- partition params: tiny ones go to XLA, large ones stream in-kernel -
    min_kernel_elems = tile_rows * _LANES
    kernel_params, small_params = [], []
    for p in model_params:
        p = jnp.asarray(p)
        (kernel_params if p.size >= min_kernel_elems else small_params).append(p)

    if kernel_params:
        dtypes = {jnp.dtype(p.dtype) for p in kernel_params}
        if len(dtypes) == 1 and next(iter(dtypes)) in (jnp.dtype(jnp.float32),
                                                       jnp.dtype(jnp.bfloat16)):
            slab_dtype = next(iter(dtypes))      # stream native dtype, upcast in-kernel
        else:
            slab_dtype = jnp.dtype(jnp.float32)
        if slab_dtype == jnp.dtype(jnp.bfloat16):
            assert tile_rows % 16 == 0           # packed-dtype sublane multiple
        tile_rows_eff = tile_rows
        slab, pid0_tbl, split_tbl, pid1_tbl = _build_param_stream(
            kernel_params, tile_rows_eff, slab_dtype)
        n_kparams = len(kernel_params)
    else:
        # No large params: minimal dummy tile (all zeros -> norm contribution 0)
        # so the same kernel still computes the BPR term.
        tile_rows_eff = 8
        slab = jnp.zeros((tile_rows_eff, _LANES), jnp.float32)
        pid0_tbl = jnp.zeros((1,), jnp.int32)
        split_tbl = jnp.full((1,), tile_rows_eff, jnp.int32)
        pid1_tbl = jnp.zeros((1,), jnp.int32)
        n_kparams = 1

    num_tiles = int(pid0_tbl.shape[0])
    chunk_rows = min(tile_rows_eff, 256)         # bounds in-kernel temporaries

    kernel = functools.partial(_bpr_kernel, B, float(reg_lambda), chunk_rows)

    grid_spec = pltpu.PrefetchScalarGridSpec(
        num_scalar_prefetch=3,
        grid=(num_tiles,),
        in_specs=[
            pl.BlockSpec((s_rows, _LANES), lambda i, *_: (0, 0)),        # pos (resident)
            pl.BlockSpec((s_rows, _LANES), lambda i, *_: (0, 0)),        # neg (resident)
            pl.BlockSpec((tile_rows_eff, _LANES), lambda i, *_: (i, 0)),  # streamed slab
        ],
        out_specs=pl.BlockSpec(memory_space=pltpu.MemorySpace.SMEM),      # scalar out
        scratch_shapes=[pltpu.VMEM((n_kparams, 8, _LANES), jnp.float32)],
    )

    out = pl.pallas_call(
        kernel,
        out_shape=jax.ShapeDtypeStruct((1,), jnp.float32),
        grid_spec=grid_spec,
        compiler_params=pltpu.CompilerParams(
            dimension_semantics=("arbitrary",),   # carried accumulator
            vmem_limit_bytes=32 * 1024 * 1024,    # safe on v5e/v6e/v7x
        ),
    )(pid0_tbl, split_tbl, pid1_tbl, pos2d, neg2d, slab)

    result = out[0]

    # Tiny parameters: their norms are a few hundred bytes of traffic; plain
    # XLA is cheaper than a 1 MiB padded DMA tile + grid step per parameter.
    if small_params:
        small_reg = sum(jnp.sqrt(jnp.sum(jnp.square(jnp.ravel(p).astype(jnp.float32))))
                        for p in small_params)
        result = result + jnp.float32(reg_lambda) * small_reg
    return result


def bpr_loss_ref(pos_scores, neg_scores, model_params, reg_lambda=0.01):
    diff = pos_scores - neg_scores
    loss = -jnp.mean(jnp.log(jax.nn.sigmoid(diff)))
    reg = jnp.float32(0.0)
    for p in model_params:
        reg = reg + jnp.linalg.norm(jnp.ravel(p).astype(jnp.float32))
    return loss + reg_lambda * reg


if __name__ == "__main__":
    key = jax.random.PRNGKey(0)
    k1, k2, k3, k4, k5, k6 = jax.random.split(key, 6)

    B = 100  # batch of (user, pos_item, neg_item) triples; not a lane multiple
    pos_scores = jax.random.normal(k1, (B,), dtype=jnp.float32)
    neg_scores = jax.random.normal(k2, (B,), dtype=jnp.float32)

    # Deterministic synthetic "model parameters".  With the small demo
    # tile_rows=16 (tile = 2048 elements) the first two stream through the
    # kernel (and share a boundary tile, exercising the segment path) while
    # the last two take the small-parameter XLA path.
    model_params = [
        jax.random.normal(k3, (64, 48), dtype=jnp.float32) * 0.1,   # 3072 elems -> kernel
        jax.random.normal(k4, (80, 40), dtype=jnp.float32) * 0.1,   # 3200 elems -> kernel
        jax.random.normal(k5, (16, 32), dtype=jnp.float32) * 0.1,   # 512 elems  -> XLA
        jax.random.normal(k6, (64,), dtype=jnp.float32) * 0.1,      # bias       -> XLA
    ]

    out = bpr_loss(pos_scores, neg_scores, model_params, reg_lambda=0.01,
                   tile_rows=16)
    out = jax.block_until_ready(out)

    ref = bpr_loss_ref(pos_scores, neg_scores, model_params, reg_lambda=0.01)
    assert jnp.allclose(out, ref, rtol=1e-4, atol=1e-4), (out, ref)

    print("KERNEL_OK")
</pallas_src>

<mosaic_0001>
module attributes {stable_mosaic.version = 11 : i64} {
  func.func @_bpr_kernel(%arg0: i32, %arg1: memref<4xi32, #tpu.memory_space<smem>>, %arg2: memref<4xi32, #tpu.memory_space<smem>>, %arg3: memref<4xi32, #tpu.memory_space<smem>>, %arg4: memref<1x128xf32, #tpu.memory_space<vmem>>, %arg5: memref<1x128xf32, #tpu.memory_space<vmem>>, %arg6: memref<16x128xf32, #tpu.memory_space<vmem>>, %arg7: memref<1xf32, #tpu.memory_space<smem>>, %arg8: memref<2x8x128xf32, #tpu.memory_space<vmem>>) attributes {dimension_semantics = [#tpu.dimension_semantics<arbitrary>], iteration_bounds = array<i64: 4>, scalar_prefetch = 3 : i64, scratch_operands = 1 : i64, tpu.core_type = #tpu.core_type<tc>, window_params = [{pipeline_mode = #tpu.pipeline_mode<synchronous>, transform_indices = @transform_0, window_bounds = array<i64: 1, 128>}, {pipeline_mode = #tpu.pipeline_mode<synchronous>, transform_indices = @transform_1, window_bounds = array<i64: 1, 128>}, {transform_indices = @transform_2, window_bounds = array<i64: 16, 128>}, {transform_indices = @transform_3, window_bounds = array<i64: 1>}]} {
    %c0_i32 = arith.constant 0 : i32
    %0 = arith.cmpi eq, %arg0, %c0_i32 : i32
    %1 = arith.extui %0 : i1 to i32
    %c0_i32_0 = arith.constant 0 : i32
    %2 = arith.cmpi ne, %1, %c0_i32_0 : i32
    scf.if %2 {
      %cst_5 = arith.constant 0.000000e+00 : f32
      %19 = vector.broadcast %cst_5 : f32 to vector<2x8x128xf32>
      %c0 = arith.constant 0 : index
      %c0_6 = arith.constant 0 : index
      %c0_7 = arith.constant 0 : index
      %20 = vector.load %arg8[%c0, %c0_6, %c0_7] : memref<2x8x128xf32, #tpu.memory_space<vmem>>, vector<2x8x128xf32>
      tpu.vector_store %arg8[%c0, %c0_6, %c0_7], %19 {strides = array<i32>} : memref<2x8x128xf32, #tpu.memory_space<vmem>>, vector<2x8x128xf32>,
    } else {
    }
    %3 = arith.index_cast %arg0 : i32 to index
    %4 = memref.load %arg1[%3] : memref<4xi32, #tpu.memory_space<smem>>
    %5 = arith.index_cast %arg0 : i32 to index
    %6 = memref.load %arg3[%5] : memref<4xi32, #tpu.memory_space<smem>>
    %7 = arith.index_cast %arg0 : i32 to index
    %8 = memref.load %arg2[%7] : memref<4xi32, #tpu.memory_space<smem>>
    %cst = arith.constant 0.000000e+00 : f32
    %9 = vector.broadcast %cst : f32 to vector<8x128xf32>
    %c16_i32 = arith.constant 16 : i32
    %10 = arith.cmpi sge, %8, %c16_i32 : i32
    %11 = arith.extui %10 : i1 to i32
    %c0_i32_1 = arith.constant 0 : i32
    %12 = arith.cmpi ne, %11, %c0_i32_1 : i32
    scf.if %12 {
      %c0_i32_5 = arith.constant 0 : i32
      %c16_i32_6 = arith.constant 16 : i32
      %19 = arith.muli %c0_i32_5, %c16_i32_6 : i32
      %20 = arith.index_cast %19 : i32 to index
      %c0 = arith.constant 0 : index
      %21 = vector.load %arg6[%20, %c0] : memref<16x128xf32, #tpu.memory_space<vmem>>, vector<16x128xf32>
      %22 = arith.mulf %21, %21 : vector<16x128xf32>
      %23 = vector.shape_cast %22 : vector<16x128xf32> to vector<2x8x128xf32>
      %cst_7 = arith.constant dense<0.000000e+00> : vector<8x128xf32>
      %24 = vector.multi_reduction <add>, %23, %cst_7 [0] : vector<2x8x128xf32> to vector<8x128xf32>
      %25 = arith.addf %9, %24 : vector<8x128xf32>
      %c1_i32 = arith.constant 1 : i32
      %26 = arith.index_cast %4 : i32 to index
      %c0_8 = arith.constant 0 : index
      %c0_9 = arith.constant 0 : index
      %27 = vector.load %arg8[%26, %c0_8, %c0_9] : memref<2x8x128xf32, #tpu.memory_space<vmem>>, vector<1x8x128xf32>
      %28 = vector.shape_cast %27 : vector<1x8x128xf32> to vector<8x128xf32>
      %29 = arith.addf %28, %25 : vector<8x128xf32>
      %30 = arith.index_cast %4 : i32 to index
      %c0_10 = arith.constant 0 : index
      %c0_11 = arith.constant 0 : index
      %31 = vector.load %arg8[%30, %c0_10, %c0_11] : memref<2x8x128xf32, #tpu.memory_space<vmem>>, vector<1x8x128xf32>
      %32 = vector.shape_cast %31 : vector<1x8x128xf32> to vector<8x128xf32>
      %33 = vector.shape_cast %29 : vector<8x128xf32> to vector<1x8x128xf32>
      tpu.vector_store %arg8[%30, %c0_10, %c0_11], %33 {strides = array<i32>} : memref<2x8x128xf32, #tpu.memory_space<vmem>>, vector<1x8x128xf32>,
    } else {
    }
    %c16_i32_2 = arith.constant 16 : i32
    %13 = arith.cmpi slt, %8, %c16_i32_2 : i32
    %14 = arith.extui %13 : i1 to i32
    %c0_i32_3 = arith.constant 0 : i32
    %15 = arith.cmpi ne, %14, %c0_i32_3 : i32
    scf.if %15 {
      %c0_i32_5 = arith.constant 0 : i32
      %c16_i32_6 = arith.constant 16 : i32
      %19 = arith.muli %c0_i32_5, %c16_i32_6 : i32
      %20 = arith.index_cast %19 : i32 to index
      %c0 = arith.constant 0 : index
      %21 = vector.load %arg6[%20, %c0] : memref<16x128xf32, #tpu.memory_space<vmem>>, vector<16x128xf32>
      %22 = arith.mulf %21, %21 : vector<16x128xf32>
      %23 = tpu.iota {dimensions = array<i32: 0>} : vector<16x128xi32>
      %24 = vector.broadcast %19 : i32 to vector<16x128xi32>
      %25 = arith.addi %23, %24 : vector<16x128xi32>
      %26 = vector.broadcast %8 : i32 to vector<16x128xi32>
      %27 = arith.cmpi slt, %25, %26 : vector<16x128xi32>
      %cst_7 = arith.constant 0.000000e+00 : f32
      %28 = vector.broadcast %cst_7 : f32 to vector<16x128xf32>
      %29 = arith.select %27, %22, %28 : vector<16x128xi1>, vector<16x128xf32>
      %30 = vector.shape_cast %29 : vector<16x128xf32> to vector<2x8x128xf32>
      %cst_8 = arith.constant dense<0.000000e+00> : vector<8x128xf32>
      %31 = vector.multi_reduction <add>, %30, %cst_8 [0] : vector<2x8x128xf32> to vector<8x128xf32>
      %32 = arith.addf %9, %31 : vector<8x128xf32>
      %33 = vector.shape_cast %22 : vector<16x128xf32> to vector<2x8x128xf32>
      %cst_9 = arith.constant dense<0.000000e+00> : vector<8x128xf32>
      %34 = vector.multi_reduction <add>, %33, %cst_9 [0] : vector<2x8x128xf32> to vector<8x128xf32>
      %35 = arith.addf %9, %34 : vector<8x128xf32>
      %c1_i32 = arith.constant 1 : i32
      %36 = arith.index_cast %4 : i32 to index
      %c0_10 = arith.constant 0 : index
      %c0_11 = arith.constant 0 : index
      %37 = vector.load %arg8[%36, %c0_10, %c0_11] : memref<2x8x128xf32, #tpu.memory_space<vmem>>, vector<1x8x128xf32>
      %38 = vector.shape_cast %37 : vector<1x8x128xf32> to vector<8x128xf32>
      %39 = arith.addf %38, %32 : vector<8x128xf32>
      %40 = arith.index_cast %4 : i32 to index
      %c0_12 = arith.constant 0 : index
      %c0_13 = arith.constant 0 : index
      %41 = vector.load %arg8[%40, %c0_12, %c0_13] : memref<2x8x128xf32, #tpu.memory_space<vmem>>, vector<1x8x128xf32>
      %42 = vector.shape_cast %41 : vector<1x8x128xf32> to vector<8x128xf32>
      %43 = vector.shape_cast %39 : vector<8x128xf32> to vector<1x8x128xf32>
      tpu.vector_store %arg8[%40, %c0_12, %c0_13], %43 {strides = array<i32>} : memref<2x8x128xf32, #tpu.memory_space<vmem>>, vector<1x8x128xf32>,
      %44 = arith.index_cast %6 : i32 to index
      %c0_14 = arith.constant 0 : index
      %c0_15 = arith.constant 0 : index
      %45 = vector.load %arg8[%44, %c0_14, %c0_15] : memref<2x8x128xf32, #tpu.memory_space<vmem>>, vector<1x8x128xf32>
      %46 = vector.shape_cast %45 : vector<1x8x128xf32> to vector<8x128xf32>
      %47 = arith.subf %35, %32 : vector<8x128xf32>
      %48 = arith.addf %46, %47 : vector<8x128xf32>
      %49 = arith.index_cast %6 : i32 to index
      %c0_16 = arith.constant 0 : index
      %c0_17 = arith.constant 0 : index
      %50 = vector.load %arg8[%49, %c0_16, %c0_17] : memref<2x8x128xf32, #tpu.memory_space<vmem>>, vector<1x8x128xf32>
      %51 = vector.shape_cast %50 : vector<1x8x128xf32> to vector<8x128xf32>
      %52 = vector.shape_cast %48 : vector<8x128xf32> to vector<1x8x128xf32>
      tpu.vector_store %arg8[%49, %c0_16, %c0_17], %52 {strides = array<i32>} : memref<2x8x128xf32, #tpu.memory_space<vmem>>, vector<1x8x128xf32>,
    } else {
    }
    %c3_i32 = arith.constant 3 : i32
    %16 = arith.cmpi eq, %arg0, %c3_i32 : i32
    %17 = arith.extui %16 : i1 to i32
    %c0_i32_4 = arith.constant 0 : i32
    %18 = arith.cmpi ne, %17, %c0_i32_4 : i32
    scf.if %18 {
      %c0 = arith.constant 0 : index
      %c0_5 = arith.constant 0 : index
      %19 = vector.load %arg4[%c0, %c0_5] : memref<1x128xf32, #tpu.memory_space<vmem>>, vector<1x128xf32>
      %c0_6 = arith.constant 0 : index
      %c0_7 = arith.constant 0 : index
      %20 = vector.load %arg5[%c0_6, %c0_7] : memref<1x128xf32, #tpu.memory_space<vmem>>, vector<1x128xf32>
      %21 = arith.subf %19, %20 : vector<1x128xf32>
      %cst_8 = arith.constant 0.000000e+00 : f32
      %22 = vector.broadcast %cst_8 : f32 to vector<1x128xf32>
      %23 = arith.minimumf %21, %22 : vector<1x128xf32>
      %24 = math.absf %21 : vector<1x128xf32>
      %cst_9 = arith.constant 0.000000e+00 : f32
      %25 = vector.broadcast %cst_9 : f32 to vector<1x128xf32>
      %26 = arith.subf %25, %24 : vector<1x128xf32>
      %27 = math.exp %26 : vector<1x128xf32>
      %28 = math.log1p %27 : vector<1x128xf32>
      %29 = arith.subf %23, %28 : vector<1x128xf32>
      %30 = tpu.iota {dimensions = array<i32: 0>} : vector<1x128xi32>
      %c128_i32 = arith.constant 128 : i32
      %31 = vector.broadcast %c128_i32 : i32 to vector<1x128xi32>
      %32 = arith.muli %30, %31 : vector<1x128xi32>
      %33 = tpu.iota {dimensions = array<i32: 1>} : vector<1x128xi32>
      %34 = arith.addi %32, %33 : vector<1x128xi32>
      %c100_i32 = arith.constant 100 : i32
      %35 = vector.broadcast %c100_i32 : i32 to vector<1x128xi32>
      %36 = arith.cmpi slt, %34, %35 : vector<1x128xi32>
      %cst_10 = arith.constant 0.000000e+00 : f32
      %37 = vector.broadcast %cst_10 : f32 to vector<1x128xf32>
      %38 = arith.select %36, %29, %37 : vector<1x128xi1>, vector<1x128xf32>
      %39 = vector.shape_cast %38 : vector<1x128xf32> to vector<1x1x128xf32>
      %cst_11 = arith.constant dense<0.000000e+00> : vector<1xf32>
      %40 = vector.multi_reduction <add>, %39, %cst_11 [1, 2] : vector<1x1x128xf32> to vector<1xf32>
      %41 = vector.shape_cast %40 : vector<1xf32> to vector<1x1x1xf32>
      %42 = vector.extract %41[0, 0, 0] : f32 from vector<1x1x1xf32>
      %cst_12 = arith.constant 0.000000e+00 : f32
      %43 = arith.subf %cst_12, %42 : f32
      %cst_13 = arith.constant 1.000000e+02 : f32
      %44 = arith.divf %43, %cst_13 : f32
      %c0_14 = arith.constant 0 : index
      %c0_15 = arith.constant 0 : index
      %c0_16 = arith.constant 0 : index
      %45 = vector.load %arg8[%c0_14, %c0_15, %c0_16] : memref<2x8x128xf32, #tpu.memory_space<vmem>>, vector<2x8x128xf32>
      %cst_17 = arith.constant dense<0.000000e+00> : vector<2x128xf32>
      %46 = vector.multi_reduction <add>, %45, %cst_17 [1] : vector<2x8x128xf32> to vector<2x128xf32>
      %cst_18 = arith.constant dense<0.000000e+00> : vector<2xf32>
      %47 = vector.multi_reduction <add>, %46, %cst_18 [1] : vector<2x128xf32> to vector<2xf32>
      %48 = vector.shape_cast %47 : vector<2xf32> to vector<2x1xf32>
      %49 = math.sqrt %48 : vector<2x1xf32>
      %50 = vector.shape_cast %49 : vector<2x1xf32> to vector<1x2x1xf32>
      %cst_19 = arith.constant dense<0.000000e+00> : vector<1xf32>
      %51 = vector.multi_reduction <add>, %50, %cst_19 [1, 2] : vector<1x2x1xf32> to vector<1xf32>
      %52 = vector.shape_cast %51 : vector<1xf32> to vector<1x1x1xf32>
      %53 = vector.extract %52[0, 0, 0] : f32 from vector<1x1x1xf32>
      %cst_20 = arith.constant 0.00999999977 : f32
      %54 = arith.mulf %cst_20, %53 : f32
      %55 = arith.addf %44, %54 : f32
      %c0_21 = arith.constant 0 : index
      %56 = memref.load %arg7[%c0_21] : memref<1xf32, #tpu.memory_space<smem>>
      memref.store %55, %arg7[%c0_21] : memref<1xf32, #tpu.memory_space<smem>>
    } else {
    }
    return
  }
  func.func @transform_0(%arg0: i32, %arg1: memref<4xi32, #tpu.memory_space<smem>>, %arg2: memref<4xi32, #tpu.memory_space<smem>>, %arg3: memref<4xi32, #tpu.memory_space<smem>>) -> (i32, i32) {
    %c0_i32 = arith.constant 0 : i32
    %c0_i32_0 = arith.constant 0 : i32
    %c0_i32_1 = arith.constant 0 : i32
    return %c0_i32, %c0_i32_0 : i32, i32
  }
  func.func @transform_1(%arg0: i32, %arg1: memref<4xi32, #tpu.memory_space<smem>>, %arg2: memref<4xi32, #tpu.memory_space<smem>>, %arg3: memref<4xi32, #tpu.memory_space<smem>>) -> (i32, i32) {
    %c0_i32 = arith.constant 0 : i32
    %c0_i32_0 = arith.constant 0 : i32
    %c0_i32_1 = arith.constant 0 : i32
    return %c0_i32, %c0_i32_0 : i32, i32
  }
  func.func @transform_2(%arg0: i32, %arg1: memref<4xi32, #tpu.memory_space<smem>>, %arg2: memref<4xi32, #tpu.memory_space<smem>>, %arg3: memref<4xi32, #tpu.memory_space<smem>>) -> (i32, i32) {
    %c0_i32 = arith.constant 0 : i32
    %c0_i32_0 = arith.constant 0 : i32
    return %arg0, %c0_i32 : i32, i32
  }
  func.func @transform_3(%arg0: i32, %arg1: memref<4xi32, #tpu.memory_space<smem>>, %arg2: memref<4xi32, #tpu.memory_space<smem>>, %arg3: memref<4xi32, #tpu.memory_space<smem>>) -> i32 {
    %c0_i32 = arith.constant 0 : i32
    %c0_i32_0 = arith.constant 0 : i32
    return %c0_i32 : i32
  }
}

</mosaic_0001>

<bundles_post_ra>
// kernel: tpu_custom_call.1
= control target key start
LH: loop header
LB: loop body
LE: loop exit
PB: predicated region body
PF: predicated region fallthrough
CT: control target
= control target key end

     0   :  { %s795_s0 = inlined_call_operand.hbm [shape: s32[4], index: 0, kind: input, shape index: {}]   ;;  %s796_s3 = inlined_call_operand.vmem [shape: f32[1,128], index: 3, kind: input, shape index: {}]   ;;  %s797_s4 = inlined_call_operand.vmem [shape: f32[1,128], index: 4, kind: input, shape index: {}]   ;;  %s798_s5 = inlined_call_operand.hbm [shape: f32[64,128], index: 5, kind: input, shape index: {}]   ;;  %s799_s6 = inlined_call_operand.hbm [shape: f32[1], index: 6, kind: output, shape index: {}]   ;;  %s800_s1 = inlined_call_operand.vmem [shape: s32[4], index: 1, kind: input, shape index: {}]   ;;  %s801_s2 = inlined_call_operand.vmem [shape: s32[4], index: 2, kind: input, shape index: {}]  }
   0x1   :  { %s482_s23 = scalar_lea.hbm %s795_s0, 16 }
   0x2   :  { %p483_p0 = scmp.ne.s32.totalorder %s795_s0, %s482_s23  ;;  %p486_p1 = scmp.lt.u32.totalorder %s482_s23, %s795_s0 }
   0x4   :  { %p488_p2 = pnand %p486_p1, %p483_p0 }
   0x6   :  { %491 = shalt.err (!%p488_p2)  }
   0x7   :  { %s600_s28 = smov [#allocation4]   ;;  %s13_s9 = sshll.u32 %s800_s1, 4  ;;  %s14_s9 = int_to_ptr.vmem [resolvable:$true] %s13_s9 }
   0x8   :  { %12 = dma.hbm_to_smem %s795_s0, 16, %s600_s28, [#allocation3] }
   0x9   :  { %s17_s12 = sshll.u32 %s801_s2, 4  ;;  %s492_s13 = scalar_lea.vmem %s14_s9, 16  ;;  %s18_s12 = int_to_ptr.vmem [resolvable:$true] %s17_s12 }
   0xa   :  { %p493_p3 = scmp.ne.s32.totalorder %s14_s9, %s492_s13  ;;  %p497_p4 = scmp.lt.s32.totalorder %s14_s9, %s14_s9 }
   0xb   :  { %p498_p5 = scmp.lt.s32.totalorder %s492_s13, %s492_s13 }
   0xd   :  { %p499_p6 = por %p498_p5, %p497_p4 }
   0xf   :  { %p500_p7 = pnand %p499_p6, %p493_p3 }
  0x11   :  { %503 = shalt.err (!%p500_p7)  }
  0x12   :  { %s601_s14 = smov [#allocation5]   ;;  %s504_s0 = scalar_lea.vmem %s18_s12, 16 }
  0x13   :  { %16 = dma.vmem_to_smem %s14_s9, 16, %s601_s14, [#allocation3] }
  0x14   :  { %p505_p8 = scmp.ne.s32.totalorder %s18_s12, %s504_s0  ;;  %p509_p9 = scmp.lt.s32.totalorder %s18_s12, %s18_s12 }
  0x15   :  { %p510_p10 = scmp.lt.s32.totalorder %s504_s0, %s504_s0 }
  0x17   :  { %p511_p11 = por %p510_p10, %p509_p9 }
  0x19   :  { %p512_p12 = pnand %p511_p11, %p505_p8 }
  0x1b   :  { %515 = shalt.err (!%p512_p12)  }
  0x1c   :  { %s602_s1 = smov [#allocation6]  }
  0x1d   :  { %20 = dma.vmem_to_smem %s18_s12, 16, %s602_s1, [#allocation3] }
  0x1e   :  { %574 = dma.done.wait [#allocation3], 48 }
  0x1f   :  { %575 = vsyncadd [#allocation3], 4294967248 }
  0x20   :  { %22 = sfence }
  0x21   :  { %23 = vsyncpa [#allocation8], 0 }
  0x22   :  { %25 = vsyncpa [#allocation8 + $0x1], 0 }
  0x23   :  { %26 = vsyncpa [#allocation9], 0  ;;  %s661_s2 = smov 0   ;;  %s663_s15 = smov 0  }
  0x24   :  { %s665_s16 = smov 0   ;;  %s667_s17 = smov 0  }
  0x25 LB: > { %s680_s18 = sadd.s32 4294967295, %s598_s17   ;;  %s683_s19 = sadd.s32 1, %s598_s17   ;;  %s598_s17 = sphi %s667_s17, %s808_s17   ;;  %s594_s16 = sphi %s665_s16, %s807_s16   ;;  %s590_s15 = sphi %s663_s15, %s806_s15   ;;  %s586_s2 = sphi %s661_s2, %s805_s2  }
  0x26   : > { %s78_s20 = ssub.s32 %s598_s17, %s683_s19  ;;  %s81_s21 = sadd.s32 1, %s594_s16 }
  0x27   : > { %p79_p13 = scmp.eq.s32.totalorder %s78_s20, 0  ;;  %p88_p0 = scmp.ne.s32.totalorder %s594_s16, %s590_s15 }
  0x28   : > { %p89_p1 = scmp.eq.s32.totalorder %s598_s17, 0  ;;  %p94_p2 = scmp.ne.s32.totalorder %s590_s15, %s586_s2 }
  0x29   : > { %s693_s22 = scalar_select %p79_p13, %s594_s16, %s81_s21  }
  0x2a   : > { %p90_p3 = por %p89_p1, %p88_p0  ;;  %p95_p4 = scmp.eq.s32.totalorder %s680_s18, 0 }
  0x2b   : > { %p434_p5 = scmp.lt.s32.totalorder %s598_s17, 4  ;;  %s145_s24 = sand.u32 1, %s594_s16  }
  0x2c   : > { %p697_p6 = por %p95_p4, %p94_p2  ;;  %s403_s25 = sshll.u32 %s145_s24, 4 }
  0x2d   : > { %s419_s26 = sshll.u32 %s598_s17, 8  ;;  %s149_s30 = scalar_lea.vmem [#allocation7], %s403_s25 }
  0x2e   : > { %s706_s29 = scalar_lea.hbm %s798_s5, %s419_s26  ;;  %s156_s7 = sshll.u32 %s149_s30, 4  ;;  %s708_s7 = int_to_ptr.vmem [resolvable:$true] %s156_s7 }
  0x2f   : > { %p710_p7 = pnand %p434_p5, %p90_p3  ;;  %s715_s9 = scalar_lea.sflag [#allocation8], %s145_s24 }
  0x30   : > { %s516_s10 = scalar_lea.hbm %s706_s29, 256  ;;  %s521_s13 = scalar_lea.hbm %s798_s5, 1024 }
  0x31   : > { %p517_p9 = scmp.ne.s32.totalorder %s706_s29, %s516_s10  ;;  %p518_p10 = pneg %p710_p7 }
  0x32   : > { %p522_p13 = scmp.lt.u32.totalorder %s706_s29, %s798_s5  ;;  %p523_p0 = scmp.lt.u32.totalorder %s521_s13, %s516_s10 }
  0x33   : > { %p519_p11 = pnand %p518_p10, %p517_p9  ;;  %p525_p2 = scmp.lt.u32.totalorder %s516_s10, %s706_s29 }
  0x34   : > { %p524_p1 = por %p523_p0, %p522_p13 }
  0x35   : > { %p520_p12 = pneg %p519_p11 }
  0x36   : > { %p526_p3 = por %p525_p2, %p524_p1 }
  0x38   : > { %p527_p4 = pnand %p526_p3, %p520_p12 }
  0x3a   : > { %530 = shalt.err (!%p527_p4)
}
  0x3b   : > { %s531_s1 = scalar_lea.vmem %s708_s7, 256  ;;  %s603_s2 = smov [#allocation7]  }
  0x3c   : > { %p532_p5 = scmp.ne.s32.totalorder %s708_s7, %s531_s1  ;;  %s536_s20 = sshll.u32 %s603_s2, 4  ;;  %s537_s20 = int_to_ptr.vmem [resolvable:$false] %s536_s20 }
  0x3d   : > { %s538_s21 = scalar_lea.vmem %s537_s20, 512  ;;  %p539_p8 = scmp.lt.s32.totalorder %s708_s7, %s537_s20 }
  0x3e   : > { %p534_p9 = pnand %p532_p5, %p518_p10  ;;  %p540_p13 = scmp.lt.s32.totalorder %s538_s21, %s531_s1 }
  0x40   : > { %p535_p11 = pneg %p534_p9  ;;  %p541_p0 = por %p540_p13, %p539_p8 }
  0x42   : > { %p542_p1 = pnand %p541_p0, %p535_p11 }
  0x44   : > { %545 = shalt.err (!%p542_p1)
}
  0x45   : > { %s604_s24 = smov 128   ;;  %s605_s25 = smov 8  }
  0x46   : > { %433 = dma.hbm_to_vmem [thread:$0]  (!%p710_p7), %s706_s29, 256, %s708_s7, %s715_s9, %s604_s24, %s604_s24, %s605_s25  }
  0x47   : > { %p164_p10 = scmp.lt.s32.totalorder %s598_s17, 5  ;;  %p804_p12 = scmp.ge.s32.totalorder %s598_s17, 1 }
  0x49   : > { %p165_p2 = pnand %p804_p12, %p164_p10 }
  0x4a   : > { %s170_s26 = sand.u32 (!%p165_p2), 1, %s590_s15  }
  0x4b   : > { %168 = sbr.rel (%p165_p2) target bundleno = 536 (0x218), region = 32  ;;  %s407_s27 = sshll.u32 (!%p165_p2), %s170_s26, 4 }
  0x4c   : > { %s171_s28 = scalar_lea.sflag (!%p165_p2), [#allocation8], %s170_s26  ;;  %s174_s30 = scalar_lea.vmem (!%p165_p2), [#allocation7], %s407_s27 }
  0x52   : > { %577 = dma.done.wait (%p697_p6), %s171_s28, 256  }
  0x53   : > { %579 = vsyncadd (%p697_p6), %s171_s28, 4294967040  ;;  %p408_p8 = scmp.ne.s32.totalorder %s680_s18, 0 }
  0x54   : > { %v606_v0 = vmov (!%p408_p8), 0.0  }
  0x55   : > { %196 = sbr.rel (%p408_p8) target bundleno = 92 (0x5c), region = 40  ;;  %197 = vst [vmem:[#allocation2] sm:$0xff] (!%p408_p8), %v606_v0  ;;  %198 = vst [vmem:[#allocation2 + $0x8] sm:$0xff] (!%p408_p8), %v606_v0 }
  0x5c PF: > { %s753_s17 = sld [smem:[#allocation4 + %s680_s18]] }
  0x5d   : > { %s756_s29 = sld [smem:[#allocation6 + %s680_s18]] }
  0x5e   : > { %s201_s7 = sld [smem:[#allocation5 + %s680_s18]] }
  0x64   : > { %p409_p7 = scmp.lt.s32.totalorder %s201_s7, 16 }
  0x65   : > { %v206_v1 = vld [vmem:[%s174_s30] sm:$0xff] (!%p409_p7)  ;;  %v207_v2 = vld [vmem:[%s174_s30 + $0x8] sm:$0xff] (!%p409_p7)  ;;  %s410_s23 = sshll.u32 (!%p409_p7), %s753_s17, 3 }
  0x66   : > { %205 = sbr.rel (%p409_p7) target bundleno = 109 (0x6d), region = 44  ;;  %v208_v3 = vmul.f32 (!%p409_p7), %v206_v1, %v206_v1  ;;  %v209_v4 = vmul.f32 (!%p409_p7), %v207_v2, %v207_v2  ;;  %s213_s8 = scalar_lea.vmem (!%p409_p7), [#allocation2], %s410_s23 }
  0x67   : > { %v214_v5 = vld [vmem:[%s213_s8] sm:$0xff] (!%p409_p7) }
  0x68   : > { %v210_v6 = vadd.f32 (!%p409_p7), %v209_v4, %v208_v3 }
  0x6a   : > { %v215_v7 = vadd.f32 (!%p409_p7), %v214_v5, %v210_v6 }
  0x6c   : > { %216 = vst [vmem:[%s213_s8] sm:$0xff] (!%p409_p7), %v215_v7 }
  0x6d PF: > { %p411_p6 = scmp.ge.s32.totalorder %s201_s7, 16 }
  0x6e   : > { %v221_v8 = vld [vmem:[%s174_s30] sm:$0xff] (!%p411_p6)  ;;  %v222_v9 = vld [vmem:[%s174_s30 + $0x8] sm:$0xff] (!%p411_p6)  ;;  %v225_v10 = vlaneseq (!%p411_p6)  ;;  %v228_v12 = vstv (!%p411_p6), %s201_s7  ;;  %s412_s9 = sshll.u32 (!%p411_p6), %s753_s17, 3  ;;  %s413_s11 = sshll.u32 (!%p411_p6), %s756_s29, 3 }
  0x6f   : > { %220 = sbr.rel (%p411_p6) target bundleno = 133 (0x85), region = 48  ;;  %v223_v11 = vmul.f32 (!%p411_p6), %v221_v8, %v221_v8  ;;  %v224_v14 = vmul.f32 (!%p411_p6), %v222_v9, %v222_v9  ;;  %s238_s10 = scalar_lea.vmem (!%p411_p6), [#allocation2], %s412_s9 }
  0x70   : > { %v226_v13 = vshrl.u32 (!%p411_p6), %v225_v10, 7  ;;  %s243_s12 = scalar_lea.vmem (!%p411_p6), [#allocation2], %s413_s11 }
  0x71   : > { %v235_v21 = vadd.f32 (!%p411_p6), %v224_v14, %v223_v11 }
  0x72   : > { %v227_v15 = vadd.s32 (!%p411_p6), 8, %v226_v13  ;;  %vm229_vm0 = vcmp.lt.s32.totalorder (!%p411_p6), %v226_v13, %v228_v12 }
  0x73   : > { %v231_v16 = vsel (!%p411_p6), %vm229_vm0, %v223_v11, 0.0  ;;  %v239_v18 = vld [vmem:[%s238_s10] sm:$0xff] (!%p411_p6) }
  0x74   : > { %vm230_vm1 = vcmp.lt.s32.totalorder (!%p411_p6), %v227_v15, %v228_v12 }
  0x75   : > { %v232_v17 = vsel (!%p411_p6), %vm230_vm1, %v224_v14, 0.0 }
  0x76   : > { %v233_v19 = vadd.f32 %v232_v17, %v231_v16 }
  0x78   : > { %v240_v20 = vadd.f32 %v239_v18, %v233_v19  ;;  %v245_v22 = vsub.f32 %v235_v21, %v233_v19 }
  0x7a   : > { %241 = vst [vmem:[%s238_s10] sm:$0xff] %v240_v20 }
  0x81   : > { %v244_v23 = vld [vmem:[%s243_s12] sm:$0xff] }
  0x82   : > { %v246_v24 = vadd.f32 %v245_v22, %v244_v23 }
  0x84   : > { %247 = vst [vmem:[%s243_s12] sm:$0xff] %v246_v24 }
  0x85 PF: > { %p414_p3 = scmp.ne.s32.totalorder %s680_s18, 3 }
  0x86   : > { %v252_v27 = vld [vmem:[%s796_s3] sm:$0x1] (!%p414_p3)  ;;  %vm309_vm2 = vcmask (!%p414_p3), 1041409   ;;  %vm312_vm3 = vcmask (!%p414_p3), 1041408   ;;  %v270_v50 = vlaneseq (!%p414_p3)  ;;  %vm278_vm6 = vcmask (!%p414_p3), 1040384  }
  0x87   : > { %251 = sbr.rel (%p414_p3) target bundleno = 521 (0x209), region = 52  ;;  %v253_v30 = vld [vmem:[%s797_s4] sm:$0x1] (!%p414_p3)  ;;  %vm323_vm8 = vcmask (!%p414_p3), 1024  }
  0x88   : > { %v254_v31 = vsub.f32 (!%p414_p3), %v252_v27, %v253_v30  ;;  %v271_v52 = vshrl.u32 (!%p414_p3), %v270_v50, 7  ;;  %v274_v54 = vand.u32 (!%p414_p3), 127, %v270_v50 }
  0x8a   : > { %v256_v34 = vand.u32 (!%p414_p3), 2147483647, %v254_v31  ;;  %v272_v55 = vmul.u32 (!%p414_p3), 128, %v271_v52  ;;  %v255_v59 = vmin.f32 (!%p414_p3), %v254_v31, 0.0 }
  0x8b   : > { %v293_v25 = vld [vmem:[#allocation2] sm:$0xff] (!%p414_p3)  ;;  %v294_v26 = vld [vmem:[#allocation2 + $0x8] sm:$0xff] (!%p414_p3) }
  0x8c   : > { %v295_v28 = vrot.slane (!%p414_p3), %v293_v25, 4  ;;  %v301_v29 = vrot.slane (!%p414_p3), %v294_v26, 4  ;;  %v257_v37 = vsub.f32 (!%p414_p3), 0.0, %v256_v34  ;;  %v275_v57 = vadd.s32 (!%p414_p3), %v274_v54, %v272_v55 }
  0x8e   : > { %v296_v32 = vadd.f32 %v295_v28, %v293_v25  ;;  %v302_v33 = vadd.f32 %v301_v29, %v294_v26  ;;  %v258_v40 = vmul.f32 1.442695, %v257_v37  ;;  %vm276_vm5 = vcmp.lt.s32.totalorder %v275_v57, 100 }
  0x90   : > { %v297_v35 = vrot.slane %v296_v32, 2  ;;  %v303_v36 = vrot.slane %v302_v33, 2  ;;  %476 = vpow2.f32 %v258_v40 }
  0x92   : > { %v298_v38 = vadd.f32 %v297_v35, %v296_v32  ;;  %v304_v39 = vadd.f32 %v303_v36, %v302_v33 }
  0x94   : > { %v299_v41 = vrot.slane %v298_v38, 1  ;;  %v305_v42 = vrot.slane %v304_v39, 1 }
  0x96   : > { %v300_v43 = vadd.f32 %v299_v41, %v298_v38  ;;  %v306_v44 = vadd.f32 %v305_v42, %v304_v39 }
  0x98   : > { %v310_v45 = vsel %vm309_vm2, %v306_v44, %v300_v43 }
  0x99   : > { %v313_v46 = vsel %vm312_vm3, %v310_v45, 0.0 }
  0x9a   : > { %314 = vadd.xlane.f32.xlu0 %v313_v46  ;;  %v477_v47 = vpop.eup %476 }
  0x9b   : > { %v260_v48 = vadd.f32 1.0, %v477_v47  ;;  %v263_v49 = vmul.f32 -0.5, %v477_v47  ;;  %v266_v53 = vand.u32 2147483647, %v477_v47 }
  0x9d   : > { %478 = vlog2.f32 %v260_v48  ;;  %v264_v51 = vadd.f32 1.0, %v263_v49  ;;  %vm267_vm4 = vcmp.lt.f32.partialorder %v266_v53, 0.0004427343 }
  0x9f   : > { %v265_v56 = vmul.f32 %v477_v47, %v264_v51 }
  0xa7   : > { %v479_v58 = vpop.eup %478 }
  0xa8   : > { %v262_v60 = vmul.f32 0.6931472, %v479_v58 }
  0xaa   : > { %v268_v61 = vsel %vm267_vm4, %v265_v56, %v262_v60 }
  0xab   : > { %v269_v62 = vsub.f32 %v255_v59, %v268_v61 }
  0xad   : > { %v277_v63 = vsel %vm276_vm5, %v269_v62, 0.0 }
  0xae   : > { %v279_v0 = vsel %vm278_vm6, %v277_v63, 0.0 }
  0xaf   : > { %280 = vadd.xlane.f32.xlu0 %v279_v0 }
 0x127   : > { %v315_v1 = vpop.xlane.xlu0 %314 }
 0x128   : > { %480 = vrsqrt.f32 %v315_v1  ;;  %vm318_vm7 = vcmp.eq.f32.partialorder %v315_v1, inf  ;;  %v321_v4 = vand.u32 2147483648, %v315_v1  ;;  %vm320_vm9 = vcmp.eq.f32.partialorder %v315_v1, 0.0 }
 0x132   : > { %v481_v2 = vpop.eup %480 }
 0x133   : > { %v317_v3 = vmul.f32 %v481_v2, %v315_v1 }
 0x135   : > { %v319_v5 = vsel %vm318_vm7, %v315_v1, %v317_v3 }
 0x136   : > { %v322_v6 = vsel %vm320_vm9, %v321_v4, %v319_v5 }
 0x137   : > { %v324_v7 = vsel %vm323_vm8, %v322_v6, 0.0 }
 0x138   : > { %325 = vadd.xlane.f32.xlu1 %v324_v7 }
 0x13c   : > { %v281_v8 = vpop.xlane.xlu0 %280 }
 0x13d   : > { %v282_v9 = vrot.slane %v281_v8, 4 }
 0x13f   : > { %v283_v10 = vadd.f32 %v282_v9, %v281_v8 }
 0x141   : > { %v284_v11 = vrot.slane %v283_v10, 2 }
 0x143   : > { %v285_v12 = vadd.f32 %v284_v11, %v283_v10 }
 0x145   : > { %v286_v13 = vrot.slane %v285_v12, 1 }
 0x147   : > { %v287_v14 = vadd.f32 %v286_v13, %v285_v12 }
 0x149   : > { %420 = vpush %v287_v14 }
 0x17a   : > { %s421_s2 = spop %420 }
 0x17b   : > { %s289_s20 = ssub.f32 0.0, %s421_s2 }
 0x17d   : > { %s292_s21 = smul.f32 0.01, %s289_s20 }
 0x1c5   : > { %v326_v15 = vpop.xlane.xlu1 %325 }
 0x1c6   : > { %v327_v16 = vrot.slane %v326_v15, 4 }
 0x1c8   : > { %v328_v17 = vadd.f32 %v327_v16, %v326_v15 }
 0x1ca   : > { %v329_v18 = vrot.slane %v328_v17, 2 }
 0x1cc   : > { %v330_v19 = vadd.f32 %v329_v18, %v328_v17 }
 0x1ce   : > { %v331_v20 = vrot.slane %v330_v19, 1 }
 0x1d0   : > { %v332_v21 = vadd.f32 %v331_v20, %v330_v19 }
 0x1d2   : > { %422 = vpush %v332_v21 }
 0x203   : > { %s423_s24 = spop %422 }
 0x204   : > { %s334_s25 = smul.f32 0.01, %s423_s24 }
 0x206   : > { %s335_s26 = sadd.f32 %s334_s25, %s292_s21 }
 0x208   : > { %337 = sst [smem:[#allocation10]] %s335_s26 }
 0x209 PF: > { %p435_p4 = scmp.eq.s32.totalorder %s680_s18, 3  ;;  %s546_s30 = scalar_lea.hbm %s799_s6, 16 }
 0x20a   : > { %p547_p5 = scmp.ne.s32.totalorder %s799_s6, %s546_s30  ;;  %p552_p13 = scmp.lt.u32.totalorder %s546_s30, %s799_s6 }
 0x20c   : > { %p548_p9 = pnand %p547_p5, %p435_p4 }
 0x20e   : > { %p549_p11 = pneg %p548_p9 }
 0x210   : > { %p554_p0 = pnand %p552_p13, %p549_p11 }
 0x212   : > { %557 = shalt.err (!%p554_p0)
}
 0x213   : > { %s607_s8 = smov [#allocation10]  }
 0x214   : > { %427 = dma.smem_to_hbm (%p435_p4), %s607_s8, 16, %s799_s6, [#allocation9]  }
 0x215   : > { %581 = dma.done.wait (%p435_p4), [#allocation9], 16  }
 0x216   : > { %583 = vsyncadd (%p435_p4), [#allocation9], 4294967280 }
 0x217   : > { %351 = sfence }
 0x218 PF: > { %p29_p1 = scmp.ge.s32.totalorder %s683_s19, 6   ;;  %s805_s2 = smov %s590_s15 }
 0x219   : > { %s806_s15 = smov %s594_s16  ;;  %s807_s16 = smov %s693_s22 }
 0x21a   : > { %s808_s17 = smov %s683_s19  ;;  %31 = sbr.rel (!%p29_p1) target bundleno = 37 (0x25), region = 89 }
 0x221   :  { %357 = vsyncpa [#allocation8], 1 }
 0x222   :  { %359 = vsyncpa [#allocation8 + $0x1], 1 }
 0x223   :  { %360 = vsyncpa [#allocation9], 1 }
 0x224   :  { %362 = vsyncpa [#allocation9 + $0x1], 1 }

</bundles_post_ra>
